<compile_context>
chip_gen: v7x
topology: tpu7x:2x2x1
jax: 0.10.0
libtpu: 0.0.40
codegen_flags: <defaults>
</compile_context>

<pallas_src>
import functools

import jax
import jax.numpy as jnp
from jax.experimental import pallas as pl
from jax.experimental.pallas import tpu as pltpu


def _vmem_config():
    """Per-TPU-generation VMEM budgeting (bytes)."""
    kind = ""
    try:
        kind = jax.devices()[0].device_kind.lower()
    except Exception:
        pass
    if "v7" in kind:
        # v7x: 64 MiB physical VMEM per TensorCore (32 MiB scoped default).
        return {"total": 40 << 20, "limit": 48 << 20, "xblock_cap": 4 << 20}
    if "v6" in kind or "v5" in kind:
        # v5e / v6e: 128 MiB physical VMEM; raise the 16/32 MiB scoped defaults.
        return {"total": 56 << 20, "limit": 64 << 20, "xblock_cap": 8 << 20}
    # Unknown generation: stay conservative.
    return {"total": 24 << 20, "limit": 32 << 20, "xblock_cap": 4 << 20}


def _pick_batch_tile(B: int) -> int:
    """Largest multiple-of-8 divisor of B that is <= 64; else full B (always legal)."""
    if B < 8 or B % 8 != 0:
        return B
    best = 8
    for t in range(8, min(B, 64) + 1, 8):
        if B % t == 0:
            best = t
    return best


def _pick_seq_tile(S: int, tile_b: int, D: int, itemsize: int, xblock_budget: int) -> int:
    """Largest sequence tile fitting the x-block budget, multiple of the sublane pack
    factor (8 for f32, 16 for bf16, 32 for int8/fp8). Uses cdiv + masking for the
    (possibly partial) last block, so S need not be divisible."""
    pack = 8 * max(1, 4 // max(1, itemsize))
    row_bytes = tile_b * D * itemsize
    max_rows = xblock_budget // max(1, row_bytes)
    if max_rows >= S:
        return S
    return max(pack, (max_rows // pack) * pack)


def _classification_kernel(x_ref, w_ref, b_ref, idx_ref, acc_ref, *,
                           inv_s, seq_len, tile_s, needs_mask):
    """Grid = (batch_blocks [parallel], seq_blocks [arbitrary/reduction]).

    x_ref  : (tile_b, tile_s, D)   input tokens for this block
    w_ref  : (D, Cp)               class-padded weight (VMEM-resident, single buffer)
    b_ref  : (1, Cp)               class-padded bias (padding = -1e30)
    idx_ref: (tile_b, 1) int32     argmax class index per batch row
    acc_ref: (tile_b, D) f32       running token-sum (VMEM scratch)
    """
    k = pl.program_id(1)  # sequence (reduction) axis — innermost, "arbitrary"

    @pl.when(k == 0)
    def _init():
        acc_ref[...] = jnp.zeros_like(acc_ref)

    x = x_ref[...]                                        # native dtype, no f32 copy
    if needs_mask:
        # Zero out rows past the true sequence length in the (partial) last block.
        seq_idx = jax.lax.broadcasted_iota(jnp.int32, x.shape, 1)
        valid = (k * tile_s + seq_idx) < seq_len
        x = jnp.where(valid, x, jnp.zeros_like(x))
    # Per-element upcast inside the reduction (exact f32 accumulation for bf16 too).
    acc_ref[...] += jnp.sum(x, axis=1, dtype=jnp.float32)

    @pl.when(k == pl.num_programs(1) - 1)
    def _finalize():
        pooled = acc_ref[...] * inv_s                                     # (tile_b, D) f32
        logits = jnp.dot(pooled.astype(w_ref.dtype), w_ref[...],
                         preferred_element_type=jnp.float32) + b_ref[...]  # (tile_b, Cp)
        cp = logits.shape[-1]
        # First-occurrence argmax; padded columns (bias -1e30) can never win.
        max_val = jnp.max(logits, axis=-1, keepdims=True)
        col = jax.lax.broadcasted_iota(jnp.int32, logits.shape, 1)
        idx = jnp.min(jnp.where(logits == max_val, col, cp), axis=-1, keepdims=True)
        idx_ref[...] = idx.astype(jnp.int32)


def classification_predict(x, weight, bias, class_type: str, *, _force_tile_s=None):
    """Returns (B,) int32 argmax class indices (device array, no host sync).

    x: (B, S, D); weight: (D, C) (transpose of torch's (C, D)); bias: (C,).
    """
    B, S, D = x.shape
    Dw, C = weight.shape
    assert Dw == D, (Dw, D)

    # Pad the class dim to a lane-dense multiple of 128; padded columns get a huge
    # negative bias so argmax never selects them.
    Cp = ((C + 127) // 128) * 128
    w_p = jnp.zeros((D, Cp), dtype=weight.dtype).at[:, :C].set(weight)
    b_p = jnp.full((1, Cp), -1e30, dtype=jnp.float32).at[0, :C].set(
        bias.astype(jnp.float32))

    if class_type == "token":
        # Only token 0 matters: slice before the kernel -> HBM traffic O(B*D).
        x_in = x[:, :1, :]
        inv_s = 1.0
    elif class_type == "gap":
        # torch.mean(x, dim=range(1, ndim-1)) == mean over sequence for 3-D x.
        x_in = x
        inv_s = 1.0 / S
    else:
        raise ValueError(f"unsupported class_type: {class_type!r}")

    Bx, Sx, _ = x_in.shape
    itemsize = x_in.dtype.itemsize

    cfg = _vmem_config()
    tile_b = _pick_batch_tile(Bx)

    # Joint VMEM budgeting: weight (single-buffered) + bias + accumulator + slack,
    # remainder split over the double-buffered x block, capped per generation.
    w_bytes = D * Cp * w_p.dtype.itemsize
    b_bytes = Cp * 4
    acc_bytes = tile_b * D * 4
    slack = 2 << 20
    remaining = cfg["total"] - w_bytes - b_bytes - acc_bytes - slack
    min_block = tile_b * D * itemsize * 8  # at least one packed sublane group of rows
    xblock_budget = min(cfg["xblock_cap"], max(remaining // 2, min_block))

    tile_s = _force_tile_s if _force_tile_s is not None else _pick_seq_tile(
        Sx, tile_b, D, itemsize, xblock_budget)
    grid = (Bx // tile_b, pl.cdiv(Sx, tile_s))
    needs_mask = (Sx % tile_s) != 0

    kernel = functools.partial(_classification_kernel, inv_s=inv_s, seq_len=Sx,
                               tile_s=tile_s, needs_mask=needs_mask)

    cost = pl.CostEstimate(
        flops=2 * Bx * D * Cp + Bx * Sx * D,
        transcendentals=0,
        bytes_accessed=Bx * Sx * D * itemsize + w_bytes + b_bytes + Bx * 4,
    )

    def run(single_buffer_consts: bool):
        const_kw = {"pipeline_mode": pl.Buffered(1)} if single_buffer_consts else {}
        return pl.pallas_call(
            kernel,
            out_shape=jax.ShapeDtypeStruct((Bx, 1), jnp.int32),
            grid_spec=pltpu.PrefetchScalarGridSpec(
                num_scalar_prefetch=0,
                grid=grid,
                in_specs=[
                    pl.BlockSpec((tile_b, tile_s, D), lambda i, k: (i, k, 0)),
                    pl.BlockSpec((D, Cp), lambda i, k: (0, 0), **const_kw),
                    pl.BlockSpec((1, Cp), lambda i, k: (0, 0), **const_kw),
                ],
                out_specs=pl.BlockSpec((tile_b, 1), lambda i, k: (i, 0)),
                scratch_shapes=[pltpu.VMEM((tile_b, D), jnp.float32)],
            ),
            compiler_params=pltpu.CompilerParams(
                dimension_semantics=("parallel", "arbitrary"),
                vmem_limit_bytes=cfg["limit"]),
            cost_estimate=cost,
        )(x_in, w_p, b_p)

    try:
        idx = run(True)
    except Exception:
        # Fallback for jax versions without BlockSpec pipeline_mode / pl.Buffered.
        idx = run(False)

    return idx[:, 0]


def classification_forward(x, weight, bias, labels, class_type: str):
    """JAX/Pallas equivalent of Classification.forward -> list[str] predictions."""
    idx = classification_predict(x, weight, bias, class_type)
    # TODO(synk): label-string lookup has no tensor representation; single
    # device->host transfer here, lookup stays in Python.
    return [labels[int(i)] for i in jax.device_get(idx)]


if __name__ == "__main__":
    # Small shapes consistent with the module: batch=2, seq=8, d_model=32, 10 classes.
    B, S, D, C = 2, 8, 32, 10
    labels = [f"class_{i}" for i in range(C)]

    key = jax.random.PRNGKey(0)
    kx, kw, kb, kx2 = jax.random.split(key, 4)

    x = jax.random.normal(kx, (B, S, D), dtype=jnp.float32)
    # torch weight is (C, D); we store its transpose (D, C) for the kernel.
    weight = jax.random.normal(kw, (D, C), dtype=jnp.float32) * 0.02
    bias = jax.random.normal(kb, (C,), dtype=jnp.float32) * 0.02

    for class_type in ("token", "gap"):
        idx = jax.block_until_ready(
            classification_predict(x, weight, bias, class_type))
        pooled = x[:, 0, :] if class_type == "token" else jnp.mean(x, axis=1)
        ref_idx = jnp.argmax(pooled @ weight + bias, axis=-1)
        assert list(jax.device_get(idx)) == list(jax.device_get(ref_idx)), class_type
        ref_preds = [labels[int(i)] for i in jax.device_get(ref_idx)]
        assert classification_forward(x, weight, bias, labels, class_type) == ref_preds

    # Non-multiple-of-8 sequence with a forced small tile exercises the masked
    # cdiv sequence grid (multi-block accumulation + partial last block).
    S2 = 20
    x2 = jax.random.normal(kx2, (B, S2, D), dtype=jnp.float32)
    idx2 = jax.block_until_ready(
        classification_predict(x2, weight, bias, "gap", _force_tile_s=8))
    ref2 = jnp.argmax(jnp.mean(x2, axis=1) @ weight + bias, axis=-1)
    assert list(jax.device_get(idx2)) == list(jax.device_get(ref2))

    print("KERNEL_OK")
</pallas_src>

<mosaic_0001>
module attributes {stable_mosaic.version = 11 : i64} {
  func.func @_classification_kernel(%arg0: i32, %arg1: i32, %arg2: memref<2x1x32xf32, #tpu.memory_space<vmem>>, %arg3: memref<32x128xf32, #tpu.memory_space<vmem>>, %arg4: memref<1x128xf32, #tpu.memory_space<vmem>>, %arg5: memref<2x1xi32, #tpu.memory_space<vmem>>, %arg6: memref<2x32xf32, #tpu.memory_space<vmem>>) attributes {dimension_semantics = [#tpu.dimension_semantics<parallel>, #tpu.dimension_semantics<arbitrary>], iteration_bounds = array<i64: 1, 1>, scalar_prefetch = 0 : i64, scratch_operands = 1 : i64, tpu.core_type = #tpu.core_type<tc>, window_params = [{transform_indices = @transform_0, window_bounds = array<i64: 2, 1, 32>}, {pipeline_mode = #tpu.pipeline_mode<synchronous>, transform_indices = @transform_1, window_bounds = array<i64: 32, 128>}, {pipeline_mode = #tpu.pipeline_mode<synchronous>, transform_indices = @transform_2, window_bounds = array<i64: 1, 128>}, {transform_indices = @transform_3, window_bounds = array<i64: 2, 1>}]} {
    %c0_i32 = arith.constant 0 : i32
    %0 = arith.cmpi eq, %arg1, %c0_i32 : i32
    %1 = arith.extui %0 : i1 to i32
    %c0_i32_0 = arith.constant 0 : i32
    %2 = arith.cmpi ne, %1, %c0_i32_0 : i32
    scf.if %2 {
      %cst_9 = arith.constant 0.000000e+00 : f32
      %11 = vector.broadcast %cst_9 : f32 to vector<2x32xf32>
      %c0_10 = arith.constant 0 : index
      %c0_11 = arith.constant 0 : index
      %12 = vector.load %arg6[%c0_10, %c0_11] : memref<2x32xf32, #tpu.memory_space<vmem>>, vector<2x32xf32>
      tpu.vector_store %arg6[%c0_10, %c0_11], %11 {strides = array<i32>} : memref<2x32xf32, #tpu.memory_space<vmem>>, vector<2x32xf32>,
    } else {
    }
    %c0 = arith.constant 0 : index
    %c0_1 = arith.constant 0 : index
    %c0_2 = arith.constant 0 : index
    %3 = vector.load %arg2[%c0, %c0_1, %c0_2] : memref<2x1x32xf32, #tpu.memory_space<vmem>>, vector<2x1x32xf32>
    %c0_3 = arith.constant 0 : index
    %c0_4 = arith.constant 0 : index
    %4 = vector.load %arg6[%c0_3, %c0_4] : memref<2x32xf32, #tpu.memory_space<vmem>>, vector<2x32xf32>
    %cst = arith.constant dense<0.000000e+00> : vector<2x32xf32>
    %5 = vector.multi_reduction <add>, %3, %cst [1] : vector<2x1x32xf32> to vector<2x32xf32>
    %6 = arith.addf %4, %5 : vector<2x32xf32>
    %c0_5 = arith.constant 0 : index
    %c0_6 = arith.constant 0 : index
    %7 = vector.load %arg6[%c0_5, %c0_6] : memref<2x32xf32, #tpu.memory_space<vmem>>, vector<2x32xf32>
    tpu.vector_store %arg6[%c0_5, %c0_6], %6 {strides = array<i32>} : memref<2x32xf32, #tpu.memory_space<vmem>>, vector<2x32xf32>,
    %c0_i32_7 = arith.constant 0 : i32
    %8 = arith.cmpi eq, %arg1, %c0_i32_7 : i32
    %9 = arith.extui %8 : i1 to i32
    %c0_i32_8 = arith.constant 0 : i32
    %10 = arith.cmpi ne, %9, %c0_i32_8 : i32
    scf.if %10 {
      %c0_9 = arith.constant 0 : index
      %c0_10 = arith.constant 0 : index
      %11 = vector.load %arg6[%c0_9, %c0_10] : memref<2x32xf32, #tpu.memory_space<vmem>>, vector<2x32xf32>
      %cst_11 = arith.constant 1.000000e+00 : f32
      %12 = vector.broadcast %cst_11 : f32 to vector<2x32xf32>
      %13 = arith.mulf %11, %12 : vector<2x32xf32>
      %c0_12 = arith.constant 0 : index
      %c0_13 = arith.constant 0 : index
      %14 = vector.load %arg3[%c0_12, %c0_13] : memref<32x128xf32, #tpu.memory_space<vmem>>, vector<32x128xf32>
      %cst_14 = arith.constant dense<0.000000e+00> : vector<2x128xf32>
      %15 = tpu.matmul %13, %14, %cst_14 {dimension_numbers = #tpu.dot_dimension_numbers<[1], [0], [0], [1], [0, 0, 1, 1], [], []>} : vector<2x32xf32>, vector<32x128xf32>, vector<2x128xf32> -> vector<2x128xf32>
      %c0_15 = arith.constant 0 : index
      %c0_16 = arith.constant 0 : index
      %16 = vector.load %arg4[%c0_15, %c0_16] : memref<1x128xf32, #tpu.memory_space<vmem>>, vector<1x128xf32>
      %17 = vector.broadcast %16 : vector<1x128xf32> to vector<2x128xf32>
      %18 = arith.addf %15, %17 : vector<2x128xf32>
      %cst_17 = arith.constant dense<0xFF800000> : vector<2xf32>
      %19 = vector.multi_reduction <maximumf>, %18, %cst_17 [1] : vector<2x128xf32> to vector<2xf32>
      %20 = vector.shape_cast %19 : vector<2xf32> to vector<2x1xf32>
      %21 = tpu.iota {dimensions = array<i32: 1>} : vector<2x128xi32>
      %22 = vector.broadcast %20 : vector<2x1xf32> to vector<2x128xf32>
      %23 = arith.cmpf oeq, %18, %22 : vector<2x128xf32>
      %c128_i32 = arith.constant 128 : i32
      %24 = vector.broadcast %c128_i32 : i32 to vector<2x128xi32>
      %25 = arith.select %23, %21, %24 : vector<2x128xi1>, vector<2x128xi32>
      %cst_18 = arith.constant dense<2147483647> : vector<2xi32>
      %26 = vector.multi_reduction <minsi>, %25, %cst_18 [1] : vector<2x128xi32> to vector<2xi32>
      %27 = vector.shape_cast %26 : vector<2xi32> to vector<2x1xi32>
      %c0_19 = arith.constant 0 : index
      %c0_20 = arith.constant 0 : index
      %28 = vector.load %arg5[%c0_19, %c0_20] : memref<2x1xi32, #tpu.memory_space<vmem>>, vector<2x1xi32>
      tpu.vector_store %arg5[%c0_19, %c0_20], %27 {strides = array<i32>} : memref<2x1xi32, #tpu.memory_space<vmem>>, vector<2x1xi32>,
    } else {
    }
    return
  }
  func.func @transform_0(%arg0: i32, %arg1: i32) -> (i32, i32, i32) {
    %c0_i32 = arith.constant 0 : i32
    %c0_i32_0 = arith.constant 0 : i32
    return %arg0, %arg1, %c0_i32 : i32, i32, i32
  }
  func.func @transform_1(%arg0: i32, %arg1: i32) -> (i32, i32) {
    %c0_i32 = arith.constant 0 : i32
    %c0_i32_0 = arith.constant 0 : i32
    %c0_i32_1 = arith.constant 0 : i32
    return %c0_i32, %c0_i32_0 : i32, i32
  }
  func.func @transform_2(%arg0: i32, %arg1: i32) -> (i32, i32) {
    %c0_i32 = arith.constant 0 : i32
    %c0_i32_0 = arith.constant 0 : i32
    %c0_i32_1 = arith.constant 0 : i32
    return %c0_i32, %c0_i32_0 : i32, i32
  }
  func.func @transform_3(%arg0: i32, %arg1: i32) -> (i32, i32) {
    %c0_i32 = arith.constant 0 : i32
    %c0_i32_0 = arith.constant 0 : i32
    return %arg0, %c0_i32 : i32, i32
  }
}

module attributes {stable_mosaic.version = 11 : i64} {
  func.func @_classification_kernel(%arg0: i32, %arg1: i32, %arg2: memref<2x1x32xf32, #tpu.memory_space<vmem>>, %arg3: memref<32x128xf32, #tpu.memory_space<vmem>>, %arg4: memref<1x128xf32, #tpu.memory_space<vmem>>, %arg5: memref<2x1xi32, #tpu.memory_space<vmem>>, %arg6: memref<2x32xf32, #tpu.memory_space<vmem>>) attributes {dimension_semantics = [#tpu.dimension_semantics<parallel>, #tpu.dimension_semantics<arbitrary>], iteration_bounds = array<i64: 1, 1>, scalar_prefetch = 0 : i64, scratch_operands = 1 : i64, tpu.core_type = #tpu.core_type<tc>, window_params = [{transform_indices = @transform_0, window_bounds = array<i64: 2, 1, 32>}, {pipeline_mode = #tpu.pipeline_mode<synchronous>, transform_indices = @transform_1, window_bounds = array<i64: 32, 128>}, {pipeline_mode = #tpu.pipeline_mode<synchronous>, transform_indices = @transform_2, window_bounds = array<i64: 1, 128>}, {transform_indices = @transform_3, window_bounds = array<i64: 2, 1>}]} {
    %c0_i32 = arith.constant 0 : i32
    %0 = arith.cmpi eq, %arg1, %c0_i32 : i32
    %1 = arith.extui %0 : i1 to i32
    %c0_i32_0 = arith.constant 0 : i32
    %2 = arith.cmpi ne, %1, %c0_i32_0 : i32
    scf.if %2 {
      %cst_9 = arith.constant 0.000000e+00 : f32
      %11 = vector.broadcast %cst_9 : f32 to vector<2x32xf32>
      %c0_10 = arith.constant 0 : index
      %c0_11 = arith.constant 0 : index
      %12 = vector.load %arg6[%c0_10, %c0_11] : memref<2x32xf32, #tpu.memory_space<vmem>>, vector<2x32xf32>
      tpu.vector_store %arg6[%c0_10, %c0_11], %11 {strides = array<i32>} : memref<2x32xf32, #tpu.memory_space<vmem>>, vector<2x32xf32>,
    } else {
    }
    %c0 = arith.constant 0 : index
    %c0_1 = arith.constant 0 : index
    %c0_2 = arith.constant 0 : index
    %3 = vector.load %arg2[%c0, %c0_1, %c0_2] : memref<2x1x32xf32, #tpu.memory_space<vmem>>, vector<2x1x32xf32>
    %c0_3 = arith.constant 0 : index
    %c0_4 = arith.constant 0 : index
    %4 = vector.load %arg6[%c0_3, %c0_4] : memref<2x32xf32, #tpu.memory_space<vmem>>, vector<2x32xf32>
    %cst = arith.constant dense<0.000000e+00> : vector<2x32xf32>
    %5 = vector.multi_reduction <add>, %3, %cst [1] : vector<2x1x32xf32> to vector<2x32xf32>
    %6 = arith.addf %4, %5 : vector<2x32xf32>
    %c0_5 = arith.constant 0 : index
    %c0_6 = arith.constant 0 : index
    %7 = vector.load %arg6[%c0_5, %c0_6] : memref<2x32xf32, #tpu.memory_space<vmem>>, vector<2x32xf32>
    tpu.vector_store %arg6[%c0_5, %c0_6], %6 {strides = array<i32>} : memref<2x32xf32, #tpu.memory_space<vmem>>, vector<2x32xf32>,
    %c0_i32_7 = arith.constant 0 : i32
    %8 = arith.cmpi eq, %arg1, %c0_i32_7 : i32
    %9 = arith.extui %8 : i1 to i32
    %c0_i32_8 = arith.constant 0 : i32
    %10 = arith.cmpi ne, %9, %c0_i32_8 : i32
    scf.if %10 {
      %c0_9 = arith.constant 0 : index
      %c0_10 = arith.constant 0 : index
      %11 = vector.load %arg6[%c0_9, %c0_10] : memref<2x32xf32, #tpu.memory_space<vmem>>, vector<2x32xf32>
      %cst_11 = arith.constant 1.000000e+00 : f32
      %12 = vector.broadcast %cst_11 : f32 to vector<2x32xf32>
      %13 = arith.mulf %11, %12 : vector<2x32xf32>
      %c0_12 = arith.constant 0 : index
      %c0_13 = arith.constant 0 : index
      %14 = vector.load %arg3[%c0_12, %c0_13] : memref<32x128xf32, #tpu.memory_space<vmem>>, vector<32x128xf32>
      %cst_14 = arith.constant dense<0.000000e+00> : vector<2x128xf32>
      %15 = tpu.matmul %13, %14, %cst_14 {dimension_numbers = #tpu.dot_dimension_numbers<[1], [0], [0], [1], [0, 0, 1, 1], [], []>} : vector<2x32xf32>, vector<32x128xf32>, vector<2x128xf32> -> vector<2x128xf32>
      %c0_15 = arith.constant 0 : index
      %c0_16 = arith.constant 0 : index
      %16 = vector.load %arg4[%c0_15, %c0_16] : memref<1x128xf32, #tpu.memory_space<vmem>>, vector<1x128xf32>
      %17 = vector.broadcast %16 : vector<1x128xf32> to vector<2x128xf32>
      %18 = arith.addf %15, %17 : vector<2x128xf32>
      %cst_17 = arith.constant dense<0xFF800000> : vector<2xf32>
      %19 = vector.multi_reduction <maximumf>, %18, %cst_17 [1] : vector<2x128xf32> to vector<2xf32>
      %20 = vector.shape_cast %19 : vector<2xf32> to vector<2x1xf32>
      %21 = tpu.iota {dimensions = array<i32: 1>} : vector<2x128xi32>
      %22 = vector.broadcast %20 : vector<2x1xf32> to vector<2x128xf32>
      %23 = arith.cmpf oeq, %18, %22 : vector<2x128xf32>
      %c128_i32 = arith.constant 128 : i32
      %24 = vector.broadcast %c128_i32 : i32 to vector<2x128xi32>
      %25 = arith.select %23, %21, %24 : vector<2x128xi1>, vector<2x128xi32>
      %cst_18 = arith.constant dense<2147483647> : vector<2xi32>
      %26 = vector.multi_reduction <minsi>, %25, %cst_18 [1] : vector<2x128xi32> to vector<2xi32>
      %27 = vector.shape_cast %26 : vector<2xi32> to vector<2x1xi32>
      %c0_19 = arith.constant 0 : index
      %c0_20 = arith.constant 0 : index
      %28 = vector.load %arg5[%c0_19, %c0_20] : memref<2x1xi32, #tpu.memory_space<vmem>>, vector<2x1xi32>
      tpu.vector_store %arg5[%c0_19, %c0_20], %27 {strides = array<i32>} : memref<2x1xi32, #tpu.memory_space<vmem>>, vector<2x1xi32>,
    } else {
    }
    return
  }
  func.func @transform_0(%arg0: i32, %arg1: i32) -> (i32, i32, i32) {
    %c0_i32 = arith.constant 0 : i32
    %c0_i32_0 = arith.constant 0 : i32
    return %arg0, %arg1, %c0_i32 : i32, i32, i32
  }
  func.func @transform_1(%arg0: i32, %arg1: i32) -> (i32, i32) {
    %c0_i32 = arith.constant 0 : i32
    %c0_i32_0 = arith.constant 0 : i32
    %c0_i32_1 = arith.constant 0 : i32
    return %c0_i32, %c0_i32_0 : i32, i32
  }
  func.func @transform_2(%arg0: i32, %arg1: i32) -> (i32, i32) {
    %c0_i32 = arith.constant 0 : i32
    %c0_i32_0 = arith.constant 0 : i32
    %c0_i32_1 = arith.constant 0 : i32
    return %c0_i32, %c0_i32_0 : i32, i32
  }
  func.func @transform_3(%arg0: i32, %arg1: i32) -> (i32, i32) {
    %c0_i32 = arith.constant 0 : i32
    %c0_i32_0 = arith.constant 0 : i32
    return %arg0, %c0_i32 : i32, i32
  }
}

</mosaic_0001>

<bundles_post_ra>
// kernel: tpu_custom_call.1
= control target key start
LH: loop header
LB: loop body
LE: loop exit
PB: predicated region body
PF: predicated region fallthrough
CT: control target
= control target key end

     0   :  { %8 = vsyncpa [#allocation4], 0  ;;  %s338_s0 = inlined_call_operand.hbm [shape: f32[2,1,32], index: 0, kind: input, shape index: {}]   ;;  %s339_s1 = inlined_call_operand.hbm [shape: f32[32,128], index: 1, kind: input, shape index: {}]   ;;  %s340_s2 = inlined_call_operand.vmem [shape: f32[1,128], index: 2, kind: input, shape index: {}]   ;;  %s341_s3 = inlined_call_operand.vmem [shape: s32[2,1], index: 3, kind: output, shape index: {}]  }
   0x1   :  { %9 = vsyncpa [#allocation6], 0  ;;  %s276_s12 = smov [#allocation3]   ;;  %s228_s16 = scalar_lea.hbm %s338_s0, 32 }
   0x2   :  { %s15_s13 = sshll.u32 %s276_s12, 4  ;;  %p229_p0 = scmp.ne.s32.totalorder %s338_s0, %s228_s16  ;;  %s16_s13 = int_to_ptr.vmem [resolvable:$true] %s15_s13 }
   0x3   :  { %p232_p1 = scmp.lt.u32.totalorder %s228_s16, %s338_s0 }
   0x5   :  { %p234_p2 = pnand %p232_p1, %p229_p0 }
   0x7   :  { %237 = shalt.err (!%p234_p2)
}
   0x8   :  { %s238_s21 = scalar_lea.vmem %s16_s13, 32  ;;  %p243_p4 = scmp.lt.s32.totalorder %s16_s13, %s16_s13 }
   0x9   :  { %p239_p3 = scmp.ne.s32.totalorder %s16_s13, %s238_s21  ;;  %p244_p5 = scmp.lt.s32.totalorder %s238_s21, %s238_s21 }
   0xb   :  { %p245_p6 = por %p244_p5, %p243_p4 }
   0xd   :  { %p246_p7 = pnand %p245_p6, %p239_p3 }
   0xf   :  { %249 = shalt.err (!%p246_p7)
}
  0x10   :  { %s277_s22 = smov 16   ;;  %s278_s23 = smov 1  }
  0x11   :  { %21 = dma.hbm_to_vmem [thread:$0]  %s338_s0, 32, %s16_s13, [#allocation4], %s277_s22, %s277_s22, %s278_s23  }
  0x12   :  { %s279_s26 = smov [#allocation5]   ;;  %s250_s30 = scalar_lea.hbm %s339_s1, 512 }
  0x13   :  { %s27_s27 = sshll.u32 %s279_s26, 4  ;;  %p251_p8 = scmp.ne.s32.totalorder %s339_s1, %s250_s30  ;;  %s28_s27 = int_to_ptr.vmem [resolvable:$true] %s27_s27 }
  0x14   :  { %p254_p9 = scmp.lt.u32.totalorder %s250_s30, %s339_s1 }
  0x16   :  { %p256_p10 = pnand %p254_p9, %p251_p8 }
  0x18   :  { %259 = shalt.err (!%p256_p10)
}
  0x19   :  { %s260_s8 = scalar_lea.vmem %s28_s27, 512  ;;  %p265_p12 = scmp.lt.s32.totalorder %s28_s27, %s28_s27 }
  0x1a   :  { %p261_p11 = scmp.ne.s32.totalorder %s28_s27, %s260_s8  ;;  %p266_p13 = scmp.lt.s32.totalorder %s260_s8, %s260_s8 }
  0x1c   :  { %p267_p0 = por %p266_p13, %p265_p12 }
  0x1e   :  { %p268_p1 = pnand %p267_p0, %p261_p11 }
  0x20   :  { %271 = shalt.err (!%p268_p1)
}
  0x21   :  { %s280_s0 = smov 128   ;;  %s281_s9 = smov 8  }
  0x22   :  { %33 = dma.hbm_to_vmem [thread:$0]  %s339_s1, 512, %s28_s27, [#allocation6], %s280_s0, %s280_s0, %s281_s9  }
  0x23   :  { %272 = dma.done.wait [#allocation4], 32  }
  0x24   :  { %273 = vsyncadd [#allocation4], 4294967264 }
  0x25   :  { %274 = dma.done.wait [#allocation6], 512  }
  0x26   :  { %275 = vsyncadd [#allocation6], 4294966784  ;;  %vm46_vm0 = vcmask 254976   ;;  %v59_v0 = vlaneseq  ;;  %v282_v1 = vmov 0.0|0.0   ;;  %v283_v2 = vmov 0.0   ;;  %v78_v7 = vld [vmem:[#allocation5] sm:$0xff] }
  0x27   :  { %212 = vmatprep.subr.bf16.mxu0 %v282_v1  ;;  %47 = vst.msk [vmem:[#allocation2] sm:$0x3] %vm46_vm0, %v283_v2  ;;  %v284_v3 = vmov 1966171168   ;;  %vm285_vm1 = vmmov 0   ;;  %v79_v8 = vld [vmem:[#allocation5 + $0x8] sm:$0xff] }
  0x28   :  { %v57_v4 = vunpack.c.l.s4 %v284_v3  ;;  %209 = vmatprep.mubr.msk.f32.mxu0 %vm285_vm1, %v283_v2  ;;  %v60_v5 = vshrl.u32 %v59_v0, 7  ;;  %v80_v9 = vld [vmem:[#allocation5 + $0x10] sm:$0xff]  ;;  %v213_v11 = vpack.c.bf16 %v79_v8, %v78_v7  ;;  %v81_v12 = vld [vmem:[#allocation5 + $0x18] sm:$0xff]  ;;  %vm89_vm2 = vcmask 261120  }
  0x29   :  { %v48_v13 = vld [vmem:[#allocation3] sm:$0x1]  ;;  %v49_v14 = vld [vmem:[#allocation3 + $0x1] sm:$0x1]  ;;  %v216_v16 = vpack.c.bf16 %v81_v12, %v80_v9  ;;  %v194_v22 = vld [vmem:[%s340_s2] ss:$0 sm:$0xff] }
  0x2a   :  { %v58_v6 = vunpack.c.0.s8 %v57_v4  ;;  %v55_v15 = vcombine.low %v48_v13, %v49_v14  ;;  %214 = vmatpush3.bf16.msra.mxu0 %v213_v11  ;;  %vm163_vm3 = vcmask 1041408   ;;  %v168_v27 = vand.u32 127, %v59_v0 }
  0x2b   :  { %215 = vmatprep.subr.bf16.mxu0 %v282_v1  ;;  %vm186_vm6 = vcmask 1024  }
  0x2c   :  { %v61_v10 = vsub.s32 %v58_v6, %v60_v5 }
  0x2e   :  { %v62_v17 = vrot.slane %v55_v15, %v61_v10  ;;  %v50_v18 = vld [vmem:[#allocation2] sm:$0x3]  ;;  %217 = vmatpush3.bf16.msra.mxu0 %v216_v16 }
  0x30   :  { %v69_v19 = vrot.slane %v62_v17, %v61_v10 }
  0x32   :  { %v71_v20 = vadd.f32 %v69_v19, %v50_v18 }
  0x34   :  { %73 = vst.msk [vmem:[#allocation2] sm:$0x3] %vm46_vm0, %v71_v20 }
  0x3b   :  { %v77_v21 = vld [vmem:[#allocation2] sm:$0x3] }
  0x3c   :  { %210 = vmatmul.mubr.msk.f32.vlgmr.msra.gmra.mrb[0].mxu0 %vm89_vm2, %v77_v21 }
 0x10f   :  { %v159_v23 = vpop.f32.mrb[0].mxu0 }
 0x110   :  { %v160_v24 = vadd.f32 %v194_v22, %v159_v23  ;;  %v211_v25 = vpop.f32.mrb[1].mxu0 }
 0x112   :  { %v164_v26 = vsel %vm163_vm3, %v160_v24, -inf }
 0x113   :  { %165 = vmax.xlane.f32.xlu0 %v164_v26 }
 0x1a0   :  { %v166_v28 = vpop.xlane.xlu0 %165 }
 0x1a1   :  { %vm169_vm4 = vcmp.eq.f32.partialorder %v160_v24, %v166_v28 }
 0x1a2   :  { %v170_v29 = vsel %vm169_vm4, %v168_v27, 128 }
 0x1a3   :  { %v171_v30 = vsel %vm163_vm3, %v170_v29, 2147483647 }
 0x1a4   :  { %v173_v31 = vshra.s32 %v171_v30, 16  ;;  %v172_v33 = vand.u32 65535, %v171_v30 }
 0x1a6   :  { %v175_v32 = vcvt.s32.f32 %v173_v31  ;;  %v174_v35 = vcvt.s32.f32 %v172_v33 }
 0x1a8   :  { %176 = vmin.xlane.f32.xlu0 %v175_v32 }
 0x235   :  { %v177_v34 = vpop.xlane.xlu0 %176 }
 0x236   :  { %vm178_vm5 = vcmp.eq.f32.partialorder %v175_v32, %v177_v34  ;;  %v183_v37 = vcvt.f32.s32 %v177_v34 }
 0x237   :  { %v179_v36 = vsel %vm178_vm5, %v174_v35, inf }
 0x238   :  { %180 = vmin.xlane.f32.xlu1 %v179_v36  ;;  %v184_v39 = vshll.u32 %v183_v37, 16 }
 0x2c5   :  { %v181_v38 = vpop.xlane.xlu1 %180 }
 0x2c6   :  { %v182_v40 = vcvt.f32.s32 %v181_v38 }
 0x2c8   :  { %v185_v41 = vadd.s32 %v184_v39, %v182_v40 }
 0x2ca   :  { %187 = vst.msk [vmem:[%s341_s3] sm:$0x3] %vm186_vm6, %v185_v41 }
 0x2cb   :  { %192 = vsyncpa [#allocation4], 1 }
 0x2cc   :  { %193 = vsyncpa [#allocation6], 1 }

// kernel: tpu_custom_call.1
= control target key start
LH: loop header
LB: loop body
LE: loop exit
PB: predicated region body
PF: predicated region fallthrough
CT: control target
= control target key end

     0   :  { %8 = vsyncpa [#allocation4], 0  ;;  %s338_s0 = inlined_call_operand.hbm [shape: f32[2,1,32], index: 0, kind: input, shape index: {}]   ;;  %s339_s1 = inlined_call_operand.hbm [shape: f32[32,128], index: 1, kind: input, shape index: {}]   ;;  %s340_s2 = inlined_call_operand.vmem [shape: f32[1,128], index: 2, kind: input, shape index: {}]   ;;  %s341_s3 = inlined_call_operand.vmem [shape: s32[2,1], index: 3, kind: output, shape index: {}]  }
   0x1   :  { %9 = vsyncpa [#allocation6], 0  ;;  %s276_s12 = smov [#allocation3]   ;;  %s228_s16 = scalar_lea.hbm %s338_s0, 32 }
   0x2   :  { %s15_s13 = sshll.u32 %s276_s12, 4  ;;  %p229_p0 = scmp.ne.s32.totalorder %s338_s0, %s228_s16  ;;  %s16_s13 = int_to_ptr.vmem [resolvable:$true] %s15_s13 }
   0x3   :  { %p232_p1 = scmp.lt.u32.totalorder %s228_s16, %s338_s0 }
   0x5   :  { %p234_p2 = pnand %p232_p1, %p229_p0 }
   0x7   :  { %237 = shalt.err (!%p234_p2)
}
   0x8   :  { %s238_s21 = scalar_lea.vmem %s16_s13, 32  ;;  %p243_p4 = scmp.lt.s32.totalorder %s16_s13, %s16_s13 }
   0x9   :  { %p239_p3 = scmp.ne.s32.totalorder %s16_s13, %s238_s21  ;;  %p244_p5 = scmp.lt.s32.totalorder %s238_s21, %s238_s21 }
   0xb   :  { %p245_p6 = por %p244_p5, %p243_p4 }
   0xd   :  { %p246_p7 = pnand %p245_p6, %p239_p3 }
   0xf   :  { %249 = shalt.err (!%p246_p7)
}
  0x10   :  { %s277_s22 = smov 16   ;;  %s278_s23 = smov 1  }
  0x11   :  { %21 = dma.hbm_to_vmem [thread:$0]  %s338_s0, 32, %s16_s13, [#allocation4], %s277_s22, %s277_s22, %s278_s23  }
  0x12   :  { %s279_s26 = smov [#allocation5]   ;;  %s250_s30 = scalar_lea.hbm %s339_s1, 512 }
  0x13   :  { %s27_s27 = sshll.u32 %s279_s26, 4  ;;  %p251_p8 = scmp.ne.s32.totalorder %s339_s1, %s250_s30  ;;  %s28_s27 = int_to_ptr.vmem [resolvable:$true] %s27_s27 }
  0x14   :  { %p254_p9 = scmp.lt.u32.totalorder %s250_s30, %s339_s1 }
  0x16   :  { %p256_p10 = pnand %p254_p9, %p251_p8 }
  0x18   :  { %259 = shalt.err (!%p256_p10)
}
  0x19   :  { %s260_s8 = scalar_lea.vmem %s28_s27, 512  ;;  %p265_p12 = scmp.lt.s32.totalorder %s28_s27, %s28_s27 }
  0x1a   :  { %p261_p11 = scmp.ne.s32.totalorder %s28_s27, %s260_s8  ;;  %p266_p13 = scmp.lt.s32.totalorder %s260_s8, %s260_s8 }
  0x1c   :  { %p267_p0 = por %p266_p13, %p265_p12 }
  0x1e   :  { %p268_p1 = pnand %p267_p0, %p261_p11 }
  0x20   :  { %271 = shalt.err (!%p268_p1)
}
  0x21   :  { %s280_s0 = smov 128   ;;  %s281_s9 = smov 8  }
  0x22   :  { %33 = dma.hbm_to_vmem [thread:$0]  %s339_s1, 512, %s28_s27, [#allocation6], %s280_s0, %s280_s0, %s281_s9  }
  0x23   :  { %272 = dma.done.wait [#allocation4], 32  }
  0x24   :  { %273 = vsyncadd [#allocation4], 4294967264 }
  0x25   :  { %274 = dma.done.wait [#allocation6], 512  }
  0x26   :  { %275 = vsyncadd [#allocation6], 4294966784  ;;  %vm46_vm0 = vcmask 254976   ;;  %v59_v0 = vlaneseq  ;;  %v282_v1 = vmov 0.0|0.0   ;;  %v283_v2 = vmov 0.0   ;;  %v78_v7 = vld [vmem:[#allocation5] sm:$0xff] }
  0x27   :  { %212 = vmatprep.subr.bf16.mxu0 %v282_v1  ;;  %47 = vst.msk [vmem:[#allocation2] sm:$0x3] %vm46_vm0, %v283_v2  ;;  %v284_v3 = vmov 1966171168   ;;  %vm285_vm1 = vmmov 0   ;;  %v79_v8 = vld [vmem:[#allocation5 + $0x8] sm:$0xff] }
  0x28   :  { %v57_v4 = vunpack.c.l.s4 %v284_v3  ;;  %209 = vmatprep.mubr.msk.f32.mxu0 %vm285_vm1, %v283_v2  ;;  %v60_v5 = vshrl.u32 %v59_v0, 7  ;;  %v80_v9 = vld [vmem:[#allocation5 + $0x10] sm:$0xff]  ;;  %v213_v11 = vpack.c.bf16 %v79_v8, %v78_v7  ;;  %v81_v12 = vld [vmem:[#allocation5 + $0x18] sm:$0xff]  ;;  %vm89_vm2 = vcmask 261120  }
  0x29   :  { %v48_v13 = vld [vmem:[#allocation3] sm:$0x1]  ;;  %v49_v14 = vld [vmem:[#allocation3 + $0x1] sm:$0x1]  ;;  %v216_v16 = vpack.c.bf16 %v81_v12, %v80_v9  ;;  %v194_v22 = vld [vmem:[%s340_s2] ss:$0 sm:$0xff] }
  0x2a   :  { %v58_v6 = vunpack.c.0.s8 %v57_v4  ;;  %v55_v15 = vcombine.low %v48_v13, %v49_v14  ;;  %214 = vmatpush3.bf16.msra.mxu0 %v213_v11  ;;  %vm163_vm3 = vcmask 1041408   ;;  %v168_v27 = vand.u32 127, %v59_v0 }
  0x2b   :  { %215 = vmatprep.subr.bf16.mxu0 %v282_v1  ;;  %vm186_vm6 = vcmask 1024  }
  0x2c   :  { %v61_v10 = vsub.s32 %v58_v6, %v60_v5 }
  0x2e   :  { %v62_v17 = vrot.slane %v55_v15, %v61_v10  ;;  %v50_v18 = vld [vmem:[#allocation2] sm:$0x3]  ;;  %217 = vmatpush3.bf16.msra.mxu0 %v216_v16 }
  0x30   :  { %v69_v19 = vrot.slane %v62_v17, %v61_v10 }
  0x32   :  { %v71_v20 = vadd.f32 %v69_v19, %v50_v18 }
  0x34   :  { %73 = vst.msk [vmem:[#allocation2] sm:$0x3] %vm46_vm0, %v71_v20 }
  0x3b   :  { %v77_v21 = vld [vmem:[#allocation2] sm:$0x3] }
  0x3c   :  { %210 = vmatmul.mubr.msk.f32.vlgmr.msra.gmra.mrb[0].mxu0 %vm89_vm2, %v77_v21 }
 0x10f   :  { %v159_v23 = vpop.f32.mrb[0].mxu0 }
 0x110   :  { %v160_v24 = vadd.f32 %v194_v22, %v159_v23  ;;  %v211_v25 = vpop.f32.mrb[1].mxu0 }
 0x112   :  { %v164_v26 = vsel %vm163_vm3, %v160_v24, -inf }
 0x113   :  { %165 = vmax.xlane.f32.xlu0 %v164_v26 }
 0x1a0   :  { %v166_v28 = vpop.xlane.xlu0 %165 }
 0x1a1   :  { %vm169_vm4 = vcmp.eq.f32.partialorder %v160_v24, %v166_v28 }
 0x1a2   :  { %v170_v29 = vsel %vm169_vm4, %v168_v27, 128 }
 0x1a3   :  { %v171_v30 = vsel %vm163_vm3, %v170_v29, 2147483647 }
 0x1a4   :  { %v173_v31 = vshra.s32 %v171_v30, 16  ;;  %v172_v33 = vand.u32 65535, %v171_v30 }
 0x1a6   :  { %v175_v32 = vcvt.s32.f32 %v173_v31  ;;  %v174_v35 = vcvt.s32.f32 %v172_v33 }
 0x1a8   :  { %176 = vmin.xlane.f32.xlu0 %v175_v32 }
 0x235   :  { %v177_v34 = vpop.xlane.xlu0 %176 }
 0x236   :  { %vm178_vm5 = vcmp.eq.f32.partialorder %v175_v32, %v177_v34  ;;  %v183_v37 = vcvt.f32.s32 %v177_v34 }
 0x237   :  { %v179_v36 = vsel %vm178_vm5, %v174_v35, inf }
 0x238   :  { %180 = vmin.xlane.f32.xlu1 %v179_v36  ;;  %v184_v39 = vshll.u32 %v183_v37, 16 }
 0x2c5   :  { %v181_v38 = vpop.xlane.xlu1 %180 }
 0x2c6   :  { %v182_v40 = vcvt.f32.s32 %v181_v38 }
 0x2c8   :  { %v185_v41 = vadd.s32 %v184_v39, %v182_v40 }
 0x2ca   :  { %187 = vst.msk [vmem:[%s341_s3] sm:$0x3] %vm186_vm6, %v185_v41 }
 0x2cb   :  { %192 = vsyncpa [#allocation4], 1 }
 0x2cc   :  { %193 = vsyncpa [#allocation6], 1 }

</bundles_post_ra>
